<compile_context>
chip_gen: v7x
topology: tpu7x:2x2x1
jax: 0.10.0
libtpu: 0.0.40
codegen_flags: <defaults>
</compile_context>

<pallas_src>
import numpy as np
import jax
import jax.numpy as jnp
from jax.experimental import pallas as pl
from jax.experimental.pallas import tpu as pltpu

F_IN = 10  # raw scaffold feature count


# ----------------------------------------------------------------------------
# Pallas kernel: fused 2-layer MLP  (x @ w1 + b1) -> ReLU -> (@ w2) + b2
# ----------------------------------------------------------------------------
def scaffold_mlp_kernel(x_ref, w1_ref, b1_ref, w2_ref, b2_ref, o_ref):
    # x_ref: [TILE_B, 10] bf16   w1_ref: [10, H] bf16    b1_ref: [1, H] f32
    # w2_ref: [H, E] bf16        b2_ref: [1, E] f32      o_ref: [TILE_B, E]
    h = jnp.dot(x_ref[...], w1_ref[...], preferred_element_type=jnp.float32)
    h = jnp.maximum(h + b1_ref[...], 0.0)            # f32 bias + ReLU (VPU)
    # TODO(synk): Dropout(0.1) is identity in eval mode; training-mode dropout
    #             would use pltpu.prng_seed / pltpu.prng_random_bits here.
    y = jnp.dot(h.astype(jnp.bfloat16), w2_ref[...],
                preferred_element_type=jnp.float32)
    o_ref[...] = (y + b2_ref[...]).astype(o_ref.dtype)


# ----------------------------------------------------------------------------
# Wrapper: batch-tiled grid, weights/biases VMEM-resident across the grid.
# ----------------------------------------------------------------------------
def prepare_params(w1, b1, w2, b2):
    """Kernel-ready params: bf16 weights (half the DMA bytes), f32 row biases."""
    return (w1.astype(jnp.bfloat16),
            b1.reshape(1, -1).astype(jnp.float32),
            w2.astype(jnp.bfloat16),
            b2.reshape(1, -1).astype(jnp.float32))


def _round_up(n, m):
    return ((n + m - 1) // m) * m


def _choose_tile_b(batch, target=1024):
    """Batch tile: multiple of 16 (bf16 sublane packing), capped at `target`,
    and small enough that the grid has >= 2 steps whenever the batch allows so
    the "parallel" grid axis actually distributes work across both v7x TCs."""
    if batch <= 16:
        return batch                                   # single full-array block
    tile = min(target, _round_up(pl.cdiv(batch, 2), 16))
    return min(tile, _round_up(batch, 16))


def scaffold_encoder_forward(x, params, *, tile_b=None, out_dtype=jnp.bfloat16):
    """x: [B, 10] -> [B, E] via a fused, batch-tiled Pallas MLP."""
    w1, b1, w2, b2 = params
    f_in, hidden = w1.shape
    _, embed = w2.shape
    B = x.shape[0]

    if x.dtype != jnp.bfloat16:
        x = x.astype(jnp.bfloat16)        # tiny [B,10]; ideally already bf16

    # ---- batch tiling -------------------------------------------------------
    if tile_b is None:
        tile_b = _choose_tile_b(B)
    if tile_b >= B:
        tile_b = B                        # block == full array (always legal)
    else:
        tile_b = max(16, _round_up(tile_b, 16))
        if tile_b >= B:
            tile_b = B
    grid = (pl.cdiv(B, tile_b),)          # ragged last block masked by Pallas

    out_itemsize = np.dtype(out_dtype).itemsize
    cost = pl.CostEstimate(
        flops=2 * B * (f_in * hidden + hidden * embed),
        transcendentals=0,
        bytes_accessed=(x.size * 2 + w1.size * 2 + w2.size * 2
                        + (b1.size + b2.size) * 4 + B * embed * out_itemsize),
    )

    return pl.pallas_call(
        scaffold_mlp_kernel,
        out_shape=jax.ShapeDtypeStruct((B, embed), out_dtype),
        grid=grid,
        in_specs=[
            pl.BlockSpec((tile_b, f_in), lambda i: (i, 0)),     # x: batch-tiled
            pl.BlockSpec((f_in, hidden), lambda i: (0, 0)),     # w1 resident
            pl.BlockSpec((1, hidden), lambda i: (0, 0)),        # b1 resident
            pl.BlockSpec((hidden, embed), lambda i: (0, 0)),    # w2 resident
            pl.BlockSpec((1, embed), lambda i: (0, 0)),         # b2 resident
        ],
        out_specs=pl.BlockSpec((tile_b, embed), lambda i: (i, 0)),
        compiler_params=pltpu.CompilerParams(
            dimension_semantics=("parallel",),   # v7x: both TCs share the batch
        ),
        cost_estimate=cost,
    )(x, w1, b1, w2, b2)


# ----------------------------------------------------------------------------
# Parameter init (deterministic, PyTorch-Linear-style uniform(+-1/sqrt(fan_in)))
# ----------------------------------------------------------------------------
def init_params(key, embed_dim):
    hidden = embed_dim // 2
    k1, k2, k3, k4 = jax.random.split(key, 4)
    bound1 = 1.0 / np.sqrt(float(F_IN))
    bound2 = 1.0 / np.sqrt(float(hidden))
    w1 = jax.random.uniform(k1, (F_IN, hidden), jnp.float32, -bound1, bound1)
    b1 = jax.random.uniform(k2, (hidden,), jnp.float32, -bound1, bound1)
    w2 = jax.random.uniform(k3, (hidden, embed_dim), jnp.float32, -bound2, bound2)
    b2 = jax.random.uniform(k4, (embed_dim,), jnp.float32, -bound2, bound2)
    return w1, b1, w2, b2


# ----------------------------------------------------------------------------
# Scaffold feature extraction (host-side glue, not part of the kernel).
# ----------------------------------------------------------------------------
def extract_scaffold_features(mol):
    if mol is None:
        return np.zeros(F_IN, dtype=np.float32)
    # TODO(synk): real RDKit descriptors (GetNumAtoms, TPSA, ...) are host-side
    #             chemistry with no TPU equivalent; a "mol" here is any
    #             array-like of 10 precomputed descriptor values.
    return np.asarray(mol, dtype=np.float32)


def forward(mol_batch, params, *, tile_b=None, out_dtype=jnp.bfloat16):
    feats = np.stack([extract_scaffold_features(m) for m in mol_batch])
    # bf16 on the wire: halves the x HBM bytes and skips an on-device cast.
    x = jnp.asarray(feats, dtype=jnp.bfloat16)
    return scaffold_encoder_forward(x, params, tile_b=tile_b, out_dtype=out_dtype)


if __name__ == "__main__":
    embed_dim = 256   # module default -> hidden = 128
    batch = 37        # not a tile multiple: exercises the ragged last block

    key = jax.random.PRNGKey(0)
    pkey, fkey = jax.random.split(key)
    w1, b1, w2, b2 = init_params(pkey, embed_dim)
    params = prepare_params(w1, b1, w2, b2)

    # Synthetic mol batch: precomputed 10-dim descriptor vectors plus one None
    # (maps to zeros, as in the reference module).
    feat_vals = jax.random.uniform(fkey, (batch, F_IN), jnp.float32, 0.0, 20.0)
    feat_np = np.asarray(feat_vals)
    mol_batch = [feat_np[i] for i in range(batch - 1)] + [None]

    # Default tile_b would be 32 here (2-step grid); tile_b=16 forces a 3-step
    # grid with a ragged 5-row last block to exercise pipelining + masking.
    out = forward(mol_batch, params, tile_b=16)
    out = jax.block_until_ready(out)
    assert out.shape == (batch, embed_dim)
    assert out.dtype == jnp.bfloat16

    # ---- cross-check #1: identical bf16-in / f32-accumulate math in JAX -----
    x_host = np.stack([extract_scaffold_features(m) for m in mol_batch])
    x_bf16 = jnp.asarray(x_host, dtype=jnp.bfloat16)
    w1_bf, b1_row, w2_bf, b2_row = params
    h_ref = jnp.maximum(
        jnp.dot(x_bf16, w1_bf, preferred_element_type=jnp.float32) + b1_row, 0.0)
    ref_same = (jnp.dot(h_ref.astype(jnp.bfloat16), w2_bf,
                        preferred_element_type=jnp.float32) + b2_row)
    np.testing.assert_allclose(np.asarray(out, dtype=np.float32),
                               np.asarray(ref_same, dtype=np.float32),
                               rtol=2e-2, atol=2e-1)

    # ---- cross-check #2: original f32 module math (loose: bf16 everywhere) --
    x_f32 = jnp.asarray(x_host, dtype=jnp.float32)
    ref_f32 = jnp.maximum(x_f32 @ w1 + b1, 0.0) @ w2 + b2
    np.testing.assert_allclose(np.asarray(out, dtype=np.float32),
                               np.asarray(ref_f32),
                               rtol=5e-2, atol=5e-1)

    print("KERNEL_OK")
</pallas_src>

<mosaic_0001>
module attributes {stable_mosaic.version = 11 : i64} {
  func.func @scaffold_mlp_kernel(%arg0: i32, %arg1: memref<16x10xbf16, #tpu.memory_space<vmem>>, %arg2: memref<10x128xbf16, #tpu.memory_space<vmem>>, %arg3: memref<1x128xf32, #tpu.memory_space<vmem>>, %arg4: memref<128x256xbf16, #tpu.memory_space<vmem>>, %arg5: memref<1x256xf32, #tpu.memory_space<vmem>>, %arg6: memref<16x256xbf16, #tpu.memory_space<vmem>>) attributes {dimension_semantics = [#tpu.dimension_semantics<parallel>], iteration_bounds = array<i64: 3>, scalar_prefetch = 0 : i64, scratch_operands = 0 : i64, tpu.core_type = #tpu.core_type<tc>, window_params = [{transform_indices = @transform_0, window_bounds = array<i64: 16, 10>}, {pipeline_mode = #tpu.pipeline_mode<synchronous>, transform_indices = @transform_1, window_bounds = array<i64: 10, 128>}, {pipeline_mode = #tpu.pipeline_mode<synchronous>, transform_indices = @transform_2, window_bounds = array<i64: 1, 128>}, {pipeline_mode = #tpu.pipeline_mode<synchronous>, transform_indices = @transform_3, window_bounds = array<i64: 128, 256>}, {pipeline_mode = #tpu.pipeline_mode<synchronous>, transform_indices = @transform_4, window_bounds = array<i64: 1, 256>}, {transform_indices = @transform_5, window_bounds = array<i64: 16, 256>}]} {
    %c0 = arith.constant 0 : index
    %c0_0 = arith.constant 0 : index
    %0 = vector.load %arg1[%c0, %c0_0] : memref<16x10xbf16, #tpu.memory_space<vmem>>, vector<16x10xbf16>
    %c0_1 = arith.constant 0 : index
    %c0_2 = arith.constant 0 : index
    %1 = vector.load %arg2[%c0_1, %c0_2] : memref<10x128xbf16, #tpu.memory_space<vmem>>, vector<10x128xbf16>
    %cst = arith.constant dense<0.000000e+00> : vector<16x128xf32>
    %2 = tpu.matmul %0, %1, %cst {dimension_numbers = #tpu.dot_dimension_numbers<[1], [0], [0], [1], [0, 0, 1, 1], [], []>} : vector<16x10xbf16>, vector<10x128xbf16>, vector<16x128xf32> -> vector<16x128xf32>
    %c0_3 = arith.constant 0 : index
    %c0_4 = arith.constant 0 : index
    %3 = vector.load %arg3[%c0_3, %c0_4] : memref<1x128xf32, #tpu.memory_space<vmem>>, vector<1x128xf32>
    %4 = vector.broadcast %3 : vector<1x128xf32> to vector<16x128xf32>
    %5 = arith.addf %2, %4 : vector<16x128xf32>
    %cst_5 = arith.constant 0.000000e+00 : f32
    %6 = vector.broadcast %cst_5 : f32 to vector<16x128xf32>
    %7 = arith.maximumf %5, %6 : vector<16x128xf32>
    %8 = arith.truncf %7 : vector<16x128xf32> to vector<16x128xbf16>
    %c0_6 = arith.constant 0 : index
    %c0_7 = arith.constant 0 : index
    %9 = vector.load %arg4[%c0_6, %c0_7] : memref<128x256xbf16, #tpu.memory_space<vmem>>, vector<128x256xbf16>
    %cst_8 = arith.constant dense<0.000000e+00> : vector<16x256xf32>
    %10 = tpu.matmul %8, %9, %cst_8 {dimension_numbers = #tpu.dot_dimension_numbers<[1], [0], [0], [1], [0, 0, 1, 1], [], []>} : vector<16x128xbf16>, vector<128x256xbf16>, vector<16x256xf32> -> vector<16x256xf32>
    %c0_9 = arith.constant 0 : index
    %c0_10 = arith.constant 0 : index
    %11 = vector.load %arg5[%c0_9, %c0_10] : memref<1x256xf32, #tpu.memory_space<vmem>>, vector<1x256xf32>
    %12 = vector.broadcast %11 : vector<1x256xf32> to vector<16x256xf32>
    %13 = arith.addf %10, %12 : vector<16x256xf32>
    %14 = arith.truncf %13 : vector<16x256xf32> to vector<16x256xbf16>
    %c0_11 = arith.constant 0 : index
    %c0_12 = arith.constant 0 : index
    %15 = vector.load %arg6[%c0_11, %c0_12] : memref<16x256xbf16, #tpu.memory_space<vmem>>, vector<16x256xbf16>
    tpu.vector_store %arg6[%c0_11, %c0_12], %14 {strides = array<i32>} : memref<16x256xbf16, #tpu.memory_space<vmem>>, vector<16x256xbf16>,
    return
  }
  func.func @transform_0(%arg0: i32) -> (i32, i32) {
    %c0_i32 = arith.constant 0 : i32
    %c0_i32_0 = arith.constant 0 : i32
    return %arg0, %c0_i32 : i32, i32
  }
  func.func @transform_1(%arg0: i32) -> (i32, i32) {
    %c0_i32 = arith.constant 0 : i32
    %c0_i32_0 = arith.constant 0 : i32
    %c0_i32_1 = arith.constant 0 : i32
    return %c0_i32, %c0_i32_0 : i32, i32
  }
  func.func @transform_2(%arg0: i32) -> (i32, i32) {
    %c0_i32 = arith.constant 0 : i32
    %c0_i32_0 = arith.constant 0 : i32
    %c0_i32_1 = arith.constant 0 : i32
    return %c0_i32, %c0_i32_0 : i32, i32
  }
  func.func @transform_3(%arg0: i32) -> (i32, i32) {
    %c0_i32 = arith.constant 0 : i32
    %c0_i32_0 = arith.constant 0 : i32
    %c0_i32_1 = arith.constant 0 : i32
    return %c0_i32, %c0_i32_0 : i32, i32
  }
  func.func @transform_4(%arg0: i32) -> (i32, i32) {
    %c0_i32 = arith.constant 0 : i32
    %c0_i32_0 = arith.constant 0 : i32
    %c0_i32_1 = arith.constant 0 : i32
    return %c0_i32, %c0_i32_0 : i32, i32
  }
  func.func @transform_5(%arg0: i32) -> (i32, i32) {
    %c0_i32 = arith.constant 0 : i32
    %c0_i32_0 = arith.constant 0 : i32
    return %arg0, %c0_i32 : i32, i32
  }
}

</mosaic_0001>

<bundles_post_ra>
// kernel: tpu_custom_call.1
= control target key start
LH: loop header
LB: loop body
LE: loop exit
PB: predicated region body
PF: predicated region fallthrough
CT: control target
= control target key end

     0   :  { %10 = vsyncpa [#allocation3], 0  ;;  %s1034_s0 = inlined_call_operand.vmem [shape: bf16[37,10], index: 0, kind: input, shape index: {}]   ;;  %s1035_s1 = inlined_call_operand.vmem [shape: bf16[10,128], index: 1, kind: input, shape index: {}]   ;;  %s1036_s2 = inlined_call_operand.vmem [shape: f32[1,128], index: 2, kind: input, shape index: {}]   ;;  %s1037_s3 = inlined_call_operand.hbm [shape: bf16[128,256], index: 3, kind: input, shape index: {}]   ;;  %s1038_s4 = inlined_call_operand.vmem [shape: f32[1,256], index: 4, kind: input, shape index: {}]   ;;  %s1039_s5 = inlined_call_operand.hbm [shape: bf16[37,256], index: 5, kind: output, shape index: {}]  }
   0x1   :  { %11 = vsyncpa [#allocation4], 0 }
   0x2   :  { %13 = vsyncpa [#allocation4 + $0x1], 0  ;;  %s873_s18 = smov 0   ;;  %s875_s19 = smov 0  }
   0x3   :  { %s877_s20 = smov 0   ;;  %s879_s21 = smov 0  }
   0x4 LB: > { %s894_s22 = sadd.s32 4294967295, %s832_s21   ;;  %s601_s23 = sadd.s32 4294967294, %s832_s21   ;;  %s832_s21 = sphi %s879_s21, %s1054_s21   ;;  %s828_s20 = sphi %s877_s20, %s1053_s20   ;;  %s824_s19 = sphi %s875_s19, %s1052_s19   ;;  %s820_s18 = sphi %s873_s18, %s1051_s18  }
   0x5   : > { %s898_s24 = sadd.s32 1, %s832_s21   ;;  %s136_s25 = sadd.s32 1, %s828_s20 }
   0x6   : > { %s133_s26 = ssub.s32 %s832_s21, %s898_s24  ;;  %p146_p0 = scmp.ne.s32.totalorder %s828_s20, %s824_s19 }
   0x7   : > { %p134_p1 = scmp.eq.s32.totalorder %s133_s26, 0  ;;  %p147_p2 = scmp.eq.s32.totalorder %s894_s22, 2 }
   0x8   : > { %p152_p3 = scmp.ne.s32.totalorder %s824_s19, %s820_s18  ;;  %p153_p4 = scmp.eq.s32.totalorder %s601_s23, 2 }
   0x9   : > { %s909_s27 = scalar_select %p134_p1, %s828_s20, %s136_s25  }
   0xa   : > { %p911_p5 = por %p147_p2, %p146_p0  ;;  %p915_p6 = por %p153_p4, %p152_p3 }
   0xb   : > { %p602_p7 = scmp.ge.s32.totalorder %s832_s21, 1  ;;  %p160_p8 = scmp.lt.s32.totalorder %s832_s21, 4 }
   0xc   : > { %s1042_s28 = scalar_select %p911_p5, 1, 0 }
   0xd   : > { %s1043_s29 = scalar_select %p915_p6, 1, 0 }
   0xe   : > { %p1040_p9 = scmp.eq.s32.totalorder %s894_s22, 0  ;;  %p922_p10 = pnand %p602_p7, %p160_p8 }
   0xf   : > { %s834_s6 = smov [#allocation2]   ;;  %s738_s11 = scalar_lea.hbm %s1037_s3, 2048 }
  0x10   : > { %s1044_s30 = scalar_select %p922_p10, 1, 0 }
  0x11   : > { %s178_s7 = sshll.u32 %s834_s6, 4  ;;  %p661_p11 = pneg %p922_p10  ;;  %s179_s7 = int_to_ptr.vmem [resolvable:$true] %s178_s7 }
  0x12   : > { %p739_p13 = scmp.ne.s32.totalorder %s1037_s3, %s738_s11  ;;  %p745_p3 = scmp.lt.u32.totalorder %s738_s11, %s1037_s3 }
  0x13   : > { %p930_p12 = pnand %p1040_p9, %p661_p11 }
  0x15   : > { %p740_p0 = pneg %p930_p12 }
  0x17   : > { %p741_p1 = pnand %p740_p0, %p739_p13 }
  0x19   : > { %p742_p2 = pneg %p741_p1 }
  0x1b   : > { %p747_p4 = pnand %p745_p3, %p742_p2 }
  0x1d   : > { %750 = shalt.err (!%p747_p4)
}
  0x1e   : > { %s751_s16 = scalar_lea.vmem %s179_s7, 2048  ;;  %p759_p9 = scmp.lt.s32.totalorder %s179_s7, %s179_s7 }
  0x1f   : > { %p752_p7 = scmp.ne.s32.totalorder %s179_s7, %s751_s16  ;;  %p760_p6 = scmp.lt.s32.totalorder %s751_s16, %s751_s16 }
  0x21   : > { %p754_p8 = pnand %p752_p7, %p740_p0  ;;  %p761_p5 = por %p760_p6, %p759_p9 }
  0x23   : > { %p755_p11 = pneg %p754_p8 }
  0x25   : > { %p762_p10 = pnand %p761_p5, %p755_p11 }
  0x27   : > { %765 = shalt.err (!%p762_p10)
}
  0x28   : > { %s835_s17 = smov 128   ;;  %s836_s23 = smov 8  }
  0x29   : > { %664 = dma.hbm_to_vmem [thread:$0]  (!%p930_p12), %s1037_s3, 2048, %s179_s7, [#allocation3], %s835_s17, %s835_s17, %s836_s23  }
  0x2a   : > { %p1046_p13 = scmp.ne.s32.totalorder %s1044_s30, 0 }
  0x2b   : > { %p1047_p1 = scmp.eq.s32.totalorder (!%p1046_p13), %s894_s22, 0 }
  0x2c   : > { %214 = sbr.rel (%p1046_p13) target bundleno = 528 (0x210), region = 40 }
  0x33   : > { %811 = dma.done.wait (%p1047_p1), [#allocation3], 2048   ;;  %p1048_p0 = pmov %p1047_p1 }
  0x34   : > { %s957_s6 = sshll.u32 %s894_s22, 1  ;;  %v837_v0 = vmov 0.0   ;;  %vm838_vm0 = vmmov 0   ;;  %vm292_vm1 = vcmask 1044480   ;;  %v712_v1 = vld [vmem:[%s1035_s1] sm:$0x1f]   ;;  %v358_v31 = vlaneseq }
  0x35   : > { %813 = vsyncadd (%p1048_p0), [#allocation3], 4294965248  ;;  %650 = vmatprep.subr.bf16.mxu0 %v837_v0  ;;  %652 = vmatprep.mubr.msk.bf16.mxu0 %vm838_vm0, %v837_v0  ;;  %p251_p5 = scmp.lt.s32.totalorder %s957_s6, 4  ;;  %v294_v3 = vsel %vm292_vm1, %v712_v1, 0  ;;  %v714_v4 = vld [vmem:[#allocation2 + $0x4] ss:$8 sps:$4 sm:$0xff]  }
  0x36   : > { %651 = vmatpush3.bf16.msra.mxu0 %v294_v3  ;;  %vm288_vm2 = vcmask 80896   ;;  %v716_v5 = vld [vmem:[#allocation2] ss:$8 sps:$4 sm:$0xff]   ;;  %448 = vmatprep.subr.bf16.mxu1 %v714_v4  ;;  %v717_v6 = vld [vmem:[#allocation2 + $0x14] ss:$8 sps:$4 sm:$0xff]   ;;  %v839_v20 = vmov 0  }
  0x37   : > { %s252_s7 = scalar_select %p251_p5, %s957_s6, 4  ;;  %449 = vmatpush1.bf16.msra.mxu1 %v716_v5  ;;  %v719_v7 = vld [vmem:[#allocation2 + $0x10] ss:$8 sps:$4 sm:$0xff]   ;;  %v720_v8 = vld [vmem:[#allocation2 + $0x24] ss:$8 sps:$4 sm:$0xff]   ;;  %480 = vmatprep.mubr.bf16.mxu1 %v839_v20  ;;  %v359_v32 = vshrl.u32 %v358_v31, 7 }
  0x38   : > { %450 = vmatprep.subr.bf16.mxu1 %v717_v6  ;;  %v722_v9 = vld [vmem:[#allocation2 + $0x20] ss:$8 sps:$4 sm:$0xff]   ;;  %v723_v10 = vld [vmem:[#allocation2 + $0x34] ss:$8 sps:$4 sm:$0xff]   ;;  %v725_v11 = vld [vmem:[#allocation2 + $0x30] ss:$8 sps:$4 sm:$0xff]  }
  0x39   : > { %s609_s8 = sshll.u32 %s252_s7, 2  ;;  %v726_v12 = vld [vmem:[#allocation2 + $0x44] ss:$8 sps:$4 sm:$0xff]   ;;  %v728_v13 = vld [vmem:[#allocation2 + $0x40] ss:$8 sps:$4 sm:$0xff]   ;;  %s243_s15 = sand.u32 1, %s824_s19  }
  0x3a   : > { %s254_s10 = scalar_lea.vmem %s1034_s0, %s609_s8  ;;  %v729_v14 = vld [vmem:[#allocation2 + $0x54] ss:$8 sps:$4 sm:$0xff]   ;;  %v731_v15 = vld [vmem:[#allocation2 + $0x50] ss:$8 sps:$4 sm:$0xff]   ;;  %v732_v16 = vld [vmem:[#allocation2 + $0x64] ss:$8 sps:$4 sm:$0xff]  }
  0x3b   : > { %v713_v2 = vld [vmem:[%s254_s10] sm:$0xff]   ;;  %451 = vmatpush1.bf16.msra.mxu1 %v719_v7  ;;  %v735_v18 = vld [vmem:[#allocation2 + $0x74] ss:$8 sps:$4 sm:$0xff]   ;;  %v737_v19 = vld [vmem:[#allocation2 + $0x70] ss:$8 sps:$4 sm:$0xff]   ;;  %v360_v33 = vsub.s32 0, %v359_v32 }
  0x3c   : > { %653 = vmatmul.mubr.msk.bf16.vlgmr.msra.gmra.mrb[0].mxu0 %vm288_vm2, %v713_v2  ;;  %452 = vmatprep.subr.bf16.mxu1 %v720_v8  ;;  %v734_v17 = vld [vmem:[#allocation2 + $0x60] ss:$8 sps:$4 sm:$0xff]   ;;  %v364_v35 = vsub.s32 1, %v359_v32  ;;  %s607_s23 = sshll.u32 %s243_s15, 4  ;;  %s974_s26 = scalar_lea.sflag [#allocation4], %s243_s15 }
  0x3d   : > { %v610_v21 = vld [vmem:[%s1036_s2] ss:$0 sm:$0xff]  ;;  %s245_s25 = scalar_lea.vmem [#allocation5], %s607_s23  ;;  %p1049_p6 = scmp.ne.s32.totalorder %s1042_s28, 0 }
  0x3e   : > { %v356_v34 = vld [vmem:[%s1038_s4] sm:$0x3]  ;;  %s514_s7 = ssub.s32 (%p1049_p6), 5, %s957_s6 }
  0x3f   : > { %453 = vmatpush1.bf16.msra.mxu1 %v722_v9  ;;  %v361_v36 = vrot.slane %v356_v34, %v360_v33  ;;  %v365_v37 = vrot.slane %v356_v34, %v364_v35  ;;  %p515_p9 = scmp.lt.s32.totalorder (%p1049_p6), %s514_s7, 2 }
  0x40   : > { %454 = vmatprep.subr.bf16.mxu1 %v723_v10 }
  0x43   : > { %455 = vmatpush1.bf16.msra.mxu1 %v725_v11 }
  0x44   : > { %456 = vmatprep.subr.bf16.mxu1 %v726_v12 }
  0x47   : > { %457 = vmatpush1.bf16.msra.mxu1 %v728_v13 }
  0x48   : > { %458 = vmatprep.subr.bf16.mxu1 %v729_v14 }
  0x4b   : > { %459 = vmatpush1.bf16.msra.mxu1 %v731_v15 }
  0x4c   : > { %460 = vmatprep.subr.bf16.mxu1 %v732_v16 }
  0x4f   : > { %461 = vmatpush1.bf16.msra.mxu1 %v734_v17 }
  0x50   : > { %462 = vmatprep.subr.bf16.mxu1 %v735_v18 }
  0x53   : > { %463 = vmatpush1.bf16.msra.mxu1 %v737_v19 }
 0x10f   : > { %v330_v22 = vpop.f32.mrb[0].mxu0 }
 0x110   : > { %v331_v23 = vadd.f32 %v610_v21, %v330_v22  ;;  %v654_v24 = vpop.f32.mrb[1].mxu0 }
 0x111   : > { %v333_v25 = vpop.f32.mrb[2].mxu0 }
 0x112   : > { %v334_v26 = vadd.f32 %v610_v21, %v333_v25  ;;  %v655_v27 = vpop.f32.mrb[3].mxu0  ;;  %v337_v28 = vmax.f32 %v331_v23, 0.0 }
 0x114   : > { %v338_v29 = vmax.f32 %v334_v26, 0.0 }
 0x116   : > { %v339_v30 = vpack.c.bf16 %v338_v29, %v337_v28 }
 0x118   : > { %481 = vmatmul.mubr.bf16.vlgmr.msra.gmra.mrb[0].mxu1 %v339_v30 }
 0x1eb   : > { %v482_v38 = vpop.f32.mrb[0].mxu1 }
 0x1ec   : > { %v483_v39 = vadd.f32 %v482_v38, %v361_v36  ;;  %v484_v40 = vpop.f32.mrb[1].mxu1 }
 0x1ed   : > { %v485_v41 = vadd.f32 %v484_v40, %v365_v37  ;;  %v486_v42 = vpop.f32.mrb[2].mxu1  ;;  %512 = sbr.rel (!%p1049_p6) target bundleno = 528 (0x210), region = 48 }
 0x1ee   : > { %v487_v43 = vadd.f32 %v486_v42, %v361_v36  ;;  %v488_v44 = vpop.f32.mrb[3].mxu1 }
 0x1ef   : > { %v643_v45 = vpack.c.bf16 %v485_v41, %v483_v39  ;;  %v489_v46 = vadd.f32 %v488_v44, %v365_v37 }
 0x1f1   : > { %503 = vst [vmem:[%s245_s25] sm:$0xff] %v643_v45  ;;  %v644_v47 = vpack.c.bf16 %v489_v46, %v487_v43 }
 0x1f3   : > { %504 = vst [vmem:[%s245_s25 + $0x8] sm:$0xff] %v644_v47 }
 0x1f4   : > { %s1056_s7 = smov (!%p515_p9, %s514_s7), 2 }
 0x1f5   : > { %s979_s8 = sshll.u32 %s1056_s7, 7 }
 0x1f6   : > { %s520_s30 = ssub.s32 256, %s979_s8 }
 0x1f7   : > { %521 = vsyncadd %s974_s26, %s520_s30  ;;  %p636_p10 = scmp.ne.s32.totalorder %s979_s8, 0  ;;  %s647_s9 = sshll.u32 %s894_s22, 8 }
 0x1f8   : > { %s988_s28 = scalar_lea.hbm %s1039_s5, %s647_s9  ;;  %s527_s12 = sshll.u32 %s245_s25, 4  ;;  %s990_s12 = int_to_ptr.vmem [resolvable:$true] %s527_s12 }
 0x1f9   : > { %s766_s6 = scalar_lea.vmem %s990_s12, %s979_s8  ;;  %s840_s13 = smov [#allocation5]  }
 0x1fa   : > { %p767_p12 = scmp.ne.s32.totalorder %s990_s12, %s766_s6  ;;  %s770_s14 = sshll.u32 %s840_s13, 4  ;;  %s771_s14 = int_to_ptr.vmem [resolvable:$false] %s770_s14 }
 0x1fb   : > { %s772_s22 = scalar_lea.vmem %s771_s14, 512  ;;  %p773_p4 = scmp.lt.s32.totalorder %s990_s12, %s771_s14 }
 0x1fc   : > { %p768_p2 = pnand %p767_p12, %p636_p10  ;;  %p774_p7 = scmp.lt.s32.totalorder %s772_s22, %s766_s6 }
 0x1fe   : > { %p769_p3 = pneg %p768_p2  ;;  %p775_p8 = por %p774_p7, %p773_p4 }
 0x200   : > { %p776_p11 = pnand %p775_p8, %p769_p3 }
 0x202   : > { %779 = shalt.err (!%p776_p11)
}
 0x203   : > { %s780_s15 = scalar_lea.hbm %s988_s28, %s979_s8  ;;  %s784_s23 = scalar_lea.hbm %s1039_s5, 640 }
 0x204   : > { %p781_p13 = scmp.ne.s32.totalorder %s988_s28, %s780_s15  ;;  %p785_p5 = scmp.lt.u32.totalorder %s988_s28, %s1039_s5 }
 0x205   : > { %p786_p6 = scmp.lt.u32.totalorder %s784_s23, %s780_s15  ;;  %p788_p12 = scmp.lt.u32.totalorder %s780_s15, %s988_s28 }
 0x206   : > { %p782_p1 = pnand %p781_p13, %p636_p10 }
 0x207   : > { %p787_p9 = por %p786_p6, %p785_p5 }
 0x208   : > { %p783_p0 = pneg %p782_p1 }
 0x209   : > { %p789_p2 = por %p788_p12, %p787_p9 }
 0x20b   : > { %p790_p3 = pnand %p789_p2, %p783_p0 }
 0x20d   : > { %793 = shalt.err (!%p790_p3)
}
 0x20e   : > { %s841_s30 = smov 128   ;;  %s842_s9 = smov 8  }
 0x20f   : > { %533 = dma.vmem_to_hbm [thread:$0]  (%p636_p10), %s990_s12, %s979_s8, %s988_s28, %s974_s26, %s841_s30, %s841_s30, %s842_s9  }
 0x210 PF: > { %p671_p4 = scmp.ge.s32.totalorder %s832_s21, 2  ;;  %s542_s10 = sand.u32 1, %s820_s18  }
 0x211   : > { %p1050_p7 = scmp.ne.s32.totalorder %s1043_s29, 0  ;;  %s543_s11 = scalar_lea.sflag [#allocation4], %s542_s10 }
 0x213   : > { %p666_p8 = pnand %p671_p4, %p1050_p7 }
 0x215   : > { %815 = dma.done.wait (!%p666_p8), %s543_s11, 256  }
 0x216   : > { %817 = vsyncadd (!%p666_p8), %s543_s11, 4294967040  ;;  %p16_p11 = scmp.ge.s32.totalorder %s898_s24, 5   ;;  %s1051_s18 = smov %s824_s19 }
 0x217   : > { %s1052_s19 = smov %s828_s20  ;;  %s1053_s20 = smov %s909_s27 }
 0x218   : > { %s1054_s21 = smov %s898_s24  ;;  %18 = sbr.rel (!%p16_p11) target bundleno = 4 (0x4), region = 80 }
 0x21f   :  { %548 = vsyncpa [#allocation3], 1 }
 0x220   :  { %550 = vsyncpa [#allocation3 + $0x1], 1 }
 0x221   :  { %551 = vsyncpa [#allocation4], 1 }
 0x222   :  { %553 = vsyncpa [#allocation4 + $0x1], 1 }

</bundles_post_ra>
